<compile_context>
chip_gen: v5e
topology: v5e:2x2
jax: 0.10.0
libtpu: 0.0.40
codegen_flags: <defaults>
</compile_context>

<pallas_src>
import jax
import jax.numpy as jnp
from jax.experimental import pallas as pl
from jax.experimental.pallas import tpu as pltpu

LEAKY_SLOPE = 0.01  # torch.nn.LeakyReLU default

LANES = 128
SUBLANES = 8


def make_qfunction_kernel(layer_shapes):
    """layer_shapes: static list of (out_features, in_features) per Linear layer."""
    n_layers = len(layer_shapes)

    def kernel(x_ref, params_ref, o_ref):
        # x_ref:      (in_size, rows_tile, 128) VMEM
        # params_ref: (n_params,) f32 SMEM, flattened [W1, b1, W2, b2, ...] (torch layout)
        # o_ref:      (out_size, rows_tile, 128) VMEM
        in_size = x_ref.shape[0]
        # One (rows_tile, 128) feature plane per input feature: full vregs.
        h = [x_ref[f] for f in range(in_size)]

        off = 0
        for layer, (out_f, in_f) in enumerate(layer_shapes):
            w_off = off
            b_off = off + out_f * in_f
            off = b_off + out_f
            new_h = []
            for o in range(out_f):
                # Statically unrolled scalar-times-vector FMAs on the VPU.
                acc = h[0] * params_ref[w_off + o * in_f]
                for i in range(1, in_f):
                    acc = acc + h[i] * params_ref[w_off + o * in_f + i]
                acc = acc + params_ref[b_off + o]
                if layer < n_layers - 1:  # LeakyReLU on hidden layers only
                    acc = jnp.where(acc > 0.0, acc, LEAKY_SLOPE * acc)
                new_h.append(acc)
            h = new_h

        for o in range(len(h)):  # len(h) == out_size; unmasked 8-sublane stores
            o_ref[o] = h[o].astype(o_ref.dtype)

    return kernel


def qfunction_forward(x, params, *, lane_major_output=False, max_tile_rows=2048):
    """x: (B, input_size) array. params: list of (W:(out,in), b:(out,)) (PyTorch layout).

    Returns (B, out_size) by default (module semantics). With lane_major_output=True it
    returns the lane-dense (out_size, B) result and skips the output transpose (preferred
    when the consumer can be fused on that layout).
    """
    B, in_size = x.shape
    layer_shapes = [tuple(w.shape) for w, _ in params]
    out_size = layer_shapes[-1][0]

    # ---- lane/sublane-dense batch layout: (in_size, rows, 128), rows % 8 == 0 ----
    block_lanes = SUBLANES * LANES  # 1024
    b_pad = -(-B // block_lanes) * block_lanes
    xt = x.astype(jnp.float32).T  # (in_size, B); a free reshape when in_size == 1
    if b_pad != B:
        # Pad only to the next 8x128 boundary (< 1024 extra lanes), never to a full tile.
        xt = jnp.pad(xt, ((0, 0), (0, b_pad - B)))
    rows_total = b_pad // LANES  # multiple of 8
    x3 = xt.reshape(in_size, rows_total, LANES)

    # ---- tile sizing ----
    # Big tiles amortize per-step overhead; >=2 tiles (when possible) lets a v7x megacore
    # shard the "parallel" axis; max_tile_rows=2048 (256K lanes) keeps the double-buffered
    # VMEM footprint at ~2*(in+out)*4B*128*rows_tile ~= 10 MiB for in=1,out=4.
    if rows_total <= SUBLANES:
        rows_tile = rows_total
    else:
        rows_tile = min(max_tile_rows, -(-rows_total // 2))
        rows_tile = max(SUBLANES, -(-rows_tile // SUBLANES) * SUBLANES)
        rows_tile = min(rows_tile, rows_total)
    grid = (pl.cdiv(rows_total, rows_tile),)  # ragged edge block handled by Pallas

    # ---- single flattened 1-D SMEM parameter array ----
    flat_params = jnp.concatenate(
        [jnp.concatenate([w.reshape(-1), b.reshape(-1)]) for w, b in params]
    ).astype(jnp.float32)

    kernel = make_qfunction_kernel(layer_shapes)

    out3 = pl.pallas_call(
        kernel,
        out_shape=jax.ShapeDtypeStruct((out_size, rows_total, LANES), jnp.float32),
        grid=grid,
        in_specs=[
            pl.BlockSpec((in_size, rows_tile, LANES), lambda i: (0, i, 0)),
            pl.BlockSpec(memory_space=pltpu.MemorySpace.SMEM),
        ],
        out_specs=pl.BlockSpec((out_size, rows_tile, LANES), lambda i: (0, i, 0)),
        compiler_params=pltpu.CompilerParams(
            dimension_semantics=("parallel",)),
    )(x3, flat_params)

    out_flat = out3.reshape(out_size, b_pad)[:, :B]  # (out_size, B), lane-major
    if lane_major_output:
        return out_flat
    return out_flat.T  # module semantics: (B, out_size)


def init_params(key, layer_sizes=(2, 3, 4), input_size=1, output_size=4):
    """Deterministic init mimicking torch.nn.Linear's uniform(-1/sqrt(in), 1/sqrt(in)).

    Weights kept in PyTorch (out_features, in_features) layout.
    """
    sizes = [input_size] + list(layer_sizes) + [output_size]
    params = []
    for in_f, out_f in zip(sizes[:-1], sizes[1:]):
        key, kw, kb = jax.random.split(key, 3)
        bound = 1.0 / jnp.sqrt(jnp.float32(in_f))
        w = jax.random.uniform(kw, (out_f, in_f), jnp.float32, -bound, bound)
        b = jax.random.uniform(kb, (out_f,), jnp.float32, -bound, bound)
        params.append((w, b))
    return params


def reference_forward(x, params):
    h = x.astype(jnp.float32)
    for i, (w, b) in enumerate(params):
        h = h @ w.T + b
        if i < len(params) - 1:
            h = jnp.where(h > 0, h, LEAKY_SLOPE * h)
    return h


if __name__ == "__main__":
    key = jax.random.PRNGKey(0)
    key, kx1, kx2 = jax.random.split(key, 3)

    params = init_params(key, layer_sizes=(2, 3, 4), input_size=1, output_size=4)

    # Small batch: single (8, 128) slab, grid of 1, padded up to 1024 lanes.
    x_small = jax.random.normal(kx1, (8, 1), jnp.float32)
    out_small = jax.block_until_ready(qfunction_forward(x_small, params))
    ref_small = reference_forward(x_small, params)
    assert out_small.shape == (8, 4), out_small.shape
    assert jnp.allclose(out_small, ref_small, atol=1e-5, rtol=1e-5), (out_small, ref_small)

    # Larger batch: 2 parallel grid steps with a ragged edge block; lane-major output path.
    x_big = jax.random.normal(kx2, (5000, 1), jnp.float32)
    out_big_lm = jax.block_until_ready(
        qfunction_forward(x_big, params, lane_major_output=True))
    ref_big = reference_forward(x_big, params)
    assert out_big_lm.shape == (4, 5000), out_big_lm.shape
    assert jnp.allclose(out_big_lm.T, ref_big, atol=1e-4, rtol=1e-4)

    # Default (module-semantics) path on the same batch.
    out_big = jax.block_until_ready(qfunction_forward(x_big, params))
    assert out_big.shape == (5000, 4), out_big.shape
    assert jnp.allclose(out_big, ref_big, atol=1e-4, rtol=1e-4)

    print("KERNEL_OK")
</pallas_src>

<mosaic_0001>
module attributes {stable_mosaic.version = 11 : i64} {
  func.func @kernel(%arg0: i32, %arg1: memref<1x8x128xf32, #tpu.memory_space<vmem>>, %arg2: memref<49xf32, #tpu.memory_space<smem>>, %arg3: memref<4x8x128xf32, #tpu.memory_space<vmem>>) attributes {dimension_semantics = [#tpu.dimension_semantics<parallel>], iteration_bounds = array<i64: 1>, scalar_prefetch = 0 : i64, scratch_operands = 0 : i64, tpu.core_type = #tpu.core_type<tc>, window_params = [{transform_indices = @transform_0, window_bounds = array<i64: 1, 8, 128>}, {transform_indices = @transform_1, window_bounds = array<i64: 49>}, {transform_indices = @transform_2, window_bounds = array<i64: 4, 8, 128>}]} {
    %c0 = arith.constant 0 : index
    %c0_0 = arith.constant 0 : index
    %c0_1 = arith.constant 0 : index
    %0 = vector.load %arg1[%c0, %c0_0, %c0_1] : memref<1x8x128xf32, #tpu.memory_space<vmem>>, vector<1x8x128xf32>
    %1 = vector.shape_cast %0 : vector<1x8x128xf32> to vector<8x128xf32>
    %c0_2 = arith.constant 0 : index
    %2 = memref.load %arg2[%c0_2] : memref<49xf32, #tpu.memory_space<smem>>
    %3 = vector.broadcast %2 : f32 to vector<8x128xf32>
    %4 = arith.mulf %1, %3 : vector<8x128xf32>
    %c2 = arith.constant 2 : index
    %5 = memref.load %arg2[%c2] : memref<49xf32, #tpu.memory_space<smem>>
    %6 = vector.broadcast %5 : f32 to vector<8x128xf32>
    %7 = arith.addf %4, %6 : vector<8x128xf32>
    %cst = arith.constant 0.000000e+00 : f32
    %8 = vector.broadcast %cst : f32 to vector<8x128xf32>
    %9 = arith.cmpf ogt, %7, %8 : vector<8x128xf32>
    %cst_3 = arith.constant 0.00999999977 : f32
    %10 = vector.broadcast %cst_3 : f32 to vector<8x128xf32>
    %11 = arith.mulf %10, %7 : vector<8x128xf32>
    %12 = arith.select %9, %7, %11 : vector<8x128xi1>, vector<8x128xf32>
    %c1 = arith.constant 1 : index
    %13 = memref.load %arg2[%c1] : memref<49xf32, #tpu.memory_space<smem>>
    %14 = vector.broadcast %13 : f32 to vector<8x128xf32>
    %15 = arith.mulf %1, %14 : vector<8x128xf32>
    %c3 = arith.constant 3 : index
    %16 = memref.load %arg2[%c3] : memref<49xf32, #tpu.memory_space<smem>>
    %17 = vector.broadcast %16 : f32 to vector<8x128xf32>
    %18 = arith.addf %15, %17 : vector<8x128xf32>
    %cst_4 = arith.constant 0.000000e+00 : f32
    %19 = vector.broadcast %cst_4 : f32 to vector<8x128xf32>
    %20 = arith.cmpf ogt, %18, %19 : vector<8x128xf32>
    %cst_5 = arith.constant 0.00999999977 : f32
    %21 = vector.broadcast %cst_5 : f32 to vector<8x128xf32>
    %22 = arith.mulf %21, %18 : vector<8x128xf32>
    %23 = arith.select %20, %18, %22 : vector<8x128xi1>, vector<8x128xf32>
    %c4 = arith.constant 4 : index
    %24 = memref.load %arg2[%c4] : memref<49xf32, #tpu.memory_space<smem>>
    %25 = vector.broadcast %24 : f32 to vector<8x128xf32>
    %26 = arith.mulf %12, %25 : vector<8x128xf32>
    %c5 = arith.constant 5 : index
    %27 = memref.load %arg2[%c5] : memref<49xf32, #tpu.memory_space<smem>>
    %28 = vector.broadcast %27 : f32 to vector<8x128xf32>
    %29 = arith.mulf %23, %28 : vector<8x128xf32>
    %30 = arith.addf %26, %29 : vector<8x128xf32>
    %c10 = arith.constant 10 : index
    %31 = memref.load %arg2[%c10] : memref<49xf32, #tpu.memory_space<smem>>
    %32 = vector.broadcast %31 : f32 to vector<8x128xf32>
    %33 = arith.addf %30, %32 : vector<8x128xf32>
    %cst_6 = arith.constant 0.000000e+00 : f32
    %34 = vector.broadcast %cst_6 : f32 to vector<8x128xf32>
    %35 = arith.cmpf ogt, %33, %34 : vector<8x128xf32>
    %cst_7 = arith.constant 0.00999999977 : f32
    %36 = vector.broadcast %cst_7 : f32 to vector<8x128xf32>
    %37 = arith.mulf %36, %33 : vector<8x128xf32>
    %38 = arith.select %35, %33, %37 : vector<8x128xi1>, vector<8x128xf32>
    %c6 = arith.constant 6 : index
    %39 = memref.load %arg2[%c6] : memref<49xf32, #tpu.memory_space<smem>>
    %40 = vector.broadcast %39 : f32 to vector<8x128xf32>
    %41 = arith.mulf %12, %40 : vector<8x128xf32>
    %c7 = arith.constant 7 : index
    %42 = memref.load %arg2[%c7] : memref<49xf32, #tpu.memory_space<smem>>
    %43 = vector.broadcast %42 : f32 to vector<8x128xf32>
    %44 = arith.mulf %23, %43 : vector<8x128xf32>
    %45 = arith.addf %41, %44 : vector<8x128xf32>
    %c11 = arith.constant 11 : index
    %46 = memref.load %arg2[%c11] : memref<49xf32, #tpu.memory_space<smem>>
    %47 = vector.broadcast %46 : f32 to vector<8x128xf32>
    %48 = arith.addf %45, %47 : vector<8x128xf32>
    %cst_8 = arith.constant 0.000000e+00 : f32
    %49 = vector.broadcast %cst_8 : f32 to vector<8x128xf32>
    %50 = arith.cmpf ogt, %48, %49 : vector<8x128xf32>
    %cst_9 = arith.constant 0.00999999977 : f32
    %51 = vector.broadcast %cst_9 : f32 to vector<8x128xf32>
    %52 = arith.mulf %51, %48 : vector<8x128xf32>
    %53 = arith.select %50, %48, %52 : vector<8x128xi1>, vector<8x128xf32>
    %c8 = arith.constant 8 : index
    %54 = memref.load %arg2[%c8] : memref<49xf32, #tpu.memory_space<smem>>
    %55 = vector.broadcast %54 : f32 to vector<8x128xf32>
    %56 = arith.mulf %12, %55 : vector<8x128xf32>
    %c9 = arith.constant 9 : index
    %57 = memref.load %arg2[%c9] : memref<49xf32, #tpu.memory_space<smem>>
    %58 = vector.broadcast %57 : f32 to vector<8x128xf32>
    %59 = arith.mulf %23, %58 : vector<8x128xf32>
    %60 = arith.addf %56, %59 : vector<8x128xf32>
    %c12 = arith.constant 12 : index
    %61 = memref.load %arg2[%c12] : memref<49xf32, #tpu.memory_space<smem>>
    %62 = vector.broadcast %61 : f32 to vector<8x128xf32>
    %63 = arith.addf %60, %62 : vector<8x128xf32>
    %cst_10 = arith.constant 0.000000e+00 : f32
    %64 = vector.broadcast %cst_10 : f32 to vector<8x128xf32>
    %65 = arith.cmpf ogt, %63, %64 : vector<8x128xf32>
    %cst_11 = arith.constant 0.00999999977 : f32
    %66 = vector.broadcast %cst_11 : f32 to vector<8x128xf32>
    %67 = arith.mulf %66, %63 : vector<8x128xf32>
    %68 = arith.select %65, %63, %67 : vector<8x128xi1>, vector<8x128xf32>
    %c13 = arith.constant 13 : index
    %69 = memref.load %arg2[%c13] : memref<49xf32, #tpu.memory_space<smem>>
    %70 = vector.broadcast %69 : f32 to vector<8x128xf32>
    %71 = arith.mulf %38, %70 : vector<8x128xf32>
    %c14 = arith.constant 14 : index
    %72 = memref.load %arg2[%c14] : memref<49xf32, #tpu.memory_space<smem>>
    %73 = vector.broadcast %72 : f32 to vector<8x128xf32>
    %74 = arith.mulf %53, %73 : vector<8x128xf32>
    %75 = arith.addf %71, %74 : vector<8x128xf32>
    %c15 = arith.constant 15 : index
    %76 = memref.load %arg2[%c15] : memref<49xf32, #tpu.memory_space<smem>>
    %77 = vector.broadcast %76 : f32 to vector<8x128xf32>
    %78 = arith.mulf %68, %77 : vector<8x128xf32>
    %79 = arith.addf %75, %78 : vector<8x128xf32>
    %c25 = arith.constant 25 : index
    %80 = memref.load %arg2[%c25] : memref<49xf32, #tpu.memory_space<smem>>
    %81 = vector.broadcast %80 : f32 to vector<8x128xf32>
    %82 = arith.addf %79, %81 : vector<8x128xf32>
    %cst_12 = arith.constant 0.000000e+00 : f32
    %83 = vector.broadcast %cst_12 : f32 to vector<8x128xf32>
    %84 = arith.cmpf ogt, %82, %83 : vector<8x128xf32>
    %cst_13 = arith.constant 0.00999999977 : f32
    %85 = vector.broadcast %cst_13 : f32 to vector<8x128xf32>
    %86 = arith.mulf %85, %82 : vector<8x128xf32>
    %87 = arith.select %84, %82, %86 : vector<8x128xi1>, vector<8x128xf32>
    %c16 = arith.constant 16 : index
    %88 = memref.load %arg2[%c16] : memref<49xf32, #tpu.memory_space<smem>>
    %89 = vector.broadcast %88 : f32 to vector<8x128xf32>
    %90 = arith.mulf %38, %89 : vector<8x128xf32>
    %c17 = arith.constant 17 : index
    %91 = memref.load %arg2[%c17] : memref<49xf32, #tpu.memory_space<smem>>
    %92 = vector.broadcast %91 : f32 to vector<8x128xf32>
    %93 = arith.mulf %53, %92 : vector<8x128xf32>
    %94 = arith.addf %90, %93 : vector<8x128xf32>
    %c18 = arith.constant 18 : index
    %95 = memref.load %arg2[%c18] : memref<49xf32, #tpu.memory_space<smem>>
    %96 = vector.broadcast %95 : f32 to vector<8x128xf32>
    %97 = arith.mulf %68, %96 : vector<8x128xf32>
    %98 = arith.addf %94, %97 : vector<8x128xf32>
    %c26 = arith.constant 26 : index
    %99 = memref.load %arg2[%c26] : memref<49xf32, #tpu.memory_space<smem>>
    %100 = vector.broadcast %99 : f32 to vector<8x128xf32>
    %101 = arith.addf %98, %100 : vector<8x128xf32>
    %cst_14 = arith.constant 0.000000e+00 : f32
    %102 = vector.broadcast %cst_14 : f32 to vector<8x128xf32>
    %103 = arith.cmpf ogt, %101, %102 : vector<8x128xf32>
    %cst_15 = arith.constant 0.00999999977 : f32
    %104 = vector.broadcast %cst_15 : f32 to vector<8x128xf32>
    %105 = arith.mulf %104, %101 : vector<8x128xf32>
    %106 = arith.select %103, %101, %105 : vector<8x128xi1>, vector<8x128xf32>
    %c19 = arith.constant 19 : index
    %107 = memref.load %arg2[%c19] : memref<49xf32, #tpu.memory_space<smem>>
    %108 = vector.broadcast %107 : f32 to vector<8x128xf32>
    %109 = arith.mulf %38, %108 : vector<8x128xf32>
    %c20 = arith.constant 20 : index
    %110 = memref.load %arg2[%c20] : memref<49xf32, #tpu.memory_space<smem>>
    %111 = vector.broadcast %110 : f32 to vector<8x128xf32>
    %112 = arith.mulf %53, %111 : vector<8x128xf32>
    %113 = arith.addf %109, %112 : vector<8x128xf32>
    %c21 = arith.constant 21 : index
    %114 = memref.load %arg2[%c21] : memref<49xf32, #tpu.memory_space<smem>>
    %115 = vector.broadcast %114 : f32 to vector<8x128xf32>
    %116 = arith.mulf %68, %115 : vector<8x128xf32>
    %117 = arith.addf %113, %116 : vector<8x128xf32>
    %c27 = arith.constant 27 : index
    %118 = memref.load %arg2[%c27] : memref<49xf32, #tpu.memory_space<smem>>
    %119 = vector.broadcast %118 : f32 to vector<8x128xf32>
    %120 = arith.addf %117, %119 : vector<8x128xf32>
    %cst_16 = arith.constant 0.000000e+00 : f32
    %121 = vector.broadcast %cst_16 : f32 to vector<8x128xf32>
    %122 = arith.cmpf ogt, %120, %121 : vector<8x128xf32>
    %cst_17 = arith.constant 0.00999999977 : f32
    %123 = vector.broadcast %cst_17 : f32 to vector<8x128xf32>
    %124 = arith.mulf %123, %120 : vector<8x128xf32>
    %125 = arith.select %122, %120, %124 : vector<8x128xi1>, vector<8x128xf32>
    %c22 = arith.constant 22 : index
    %126 = memref.load %arg2[%c22] : memref<49xf32, #tpu.memory_space<smem>>
    %127 = vector.broadcast %126 : f32 to vector<8x128xf32>
    %128 = arith.mulf %38, %127 : vector<8x128xf32>
    %c23 = arith.constant 23 : index
    %129 = memref.load %arg2[%c23] : memref<49xf32, #tpu.memory_space<smem>>
    %130 = vector.broadcast %129 : f32 to vector<8x128xf32>
    %131 = arith.mulf %53, %130 : vector<8x128xf32>
    %132 = arith.addf %128, %131 : vector<8x128xf32>
    %c24 = arith.constant 24 : index
    %133 = memref.load %arg2[%c24] : memref<49xf32, #tpu.memory_space<smem>>
    %134 = vector.broadcast %133 : f32 to vector<8x128xf32>
    %135 = arith.mulf %68, %134 : vector<8x128xf32>
    %136 = arith.addf %132, %135 : vector<8x128xf32>
    %c28 = arith.constant 28 : index
    %137 = memref.load %arg2[%c28] : memref<49xf32, #tpu.memory_space<smem>>
    %138 = vector.broadcast %137 : f32 to vector<8x128xf32>
    %139 = arith.addf %136, %138 : vector<8x128xf32>
    %cst_18 = arith.constant 0.000000e+00 : f32
    %140 = vector.broadcast %cst_18 : f32 to vector<8x128xf32>
    %141 = arith.cmpf ogt, %139, %140 : vector<8x128xf32>
    %cst_19 = arith.constant 0.00999999977 : f32
    %142 = vector.broadcast %cst_19 : f32 to vector<8x128xf32>
    %143 = arith.mulf %142, %139 : vector<8x128xf32>
    %144 = arith.select %141, %139, %143 : vector<8x128xi1>, vector<8x128xf32>
    %c29 = arith.constant 29 : index
    %145 = memref.load %arg2[%c29] : memref<49xf32, #tpu.memory_space<smem>>
    %146 = vector.broadcast %145 : f32 to vector<8x128xf32>
    %147 = arith.mulf %87, %146 : vector<8x128xf32>
    %c30 = arith.constant 30 : index
    %148 = memref.load %arg2[%c30] : memref<49xf32, #tpu.memory_space<smem>>
    %149 = vector.broadcast %148 : f32 to vector<8x128xf32>
    %150 = arith.mulf %106, %149 : vector<8x128xf32>
    %151 = arith.addf %147, %150 : vector<8x128xf32>
    %c31 = arith.constant 31 : index
    %152 = memref.load %arg2[%c31] : memref<49xf32, #tpu.memory_space<smem>>
    %153 = vector.broadcast %152 : f32 to vector<8x128xf32>
    %154 = arith.mulf %125, %153 : vector<8x128xf32>
    %155 = arith.addf %151, %154 : vector<8x128xf32>
    %c32 = arith.constant 32 : index
    %156 = memref.load %arg2[%c32] : memref<49xf32, #tpu.memory_space<smem>>
    %157 = vector.broadcast %156 : f32 to vector<8x128xf32>
    %158 = arith.mulf %144, %157 : vector<8x128xf32>
    %159 = arith.addf %155, %158 : vector<8x128xf32>
    %c45 = arith.constant 45 : index
    %160 = memref.load %arg2[%c45] : memref<49xf32, #tpu.memory_space<smem>>
    %161 = vector.broadcast %160 : f32 to vector<8x128xf32>
    %162 = arith.addf %159, %161 : vector<8x128xf32>
    %c33 = arith.constant 33 : index
    %163 = memref.load %arg2[%c33] : memref<49xf32, #tpu.memory_space<smem>>
    %164 = vector.broadcast %163 : f32 to vector<8x128xf32>
    %165 = arith.mulf %87, %164 : vector<8x128xf32>
    %c34 = arith.constant 34 : index
    %166 = memref.load %arg2[%c34] : memref<49xf32, #tpu.memory_space<smem>>
    %167 = vector.broadcast %166 : f32 to vector<8x128xf32>
    %168 = arith.mulf %106, %167 : vector<8x128xf32>
    %169 = arith.addf %165, %168 : vector<8x128xf32>
    %c35 = arith.constant 35 : index
    %170 = memref.load %arg2[%c35] : memref<49xf32, #tpu.memory_space<smem>>
    %171 = vector.broadcast %170 : f32 to vector<8x128xf32>
    %172 = arith.mulf %125, %171 : vector<8x128xf32>
    %173 = arith.addf %169, %172 : vector<8x128xf32>
    %c36 = arith.constant 36 : index
    %174 = memref.load %arg2[%c36] : memref<49xf32, #tpu.memory_space<smem>>
    %175 = vector.broadcast %174 : f32 to vector<8x128xf32>
    %176 = arith.mulf %144, %175 : vector<8x128xf32>
    %177 = arith.addf %173, %176 : vector<8x128xf32>
    %c46 = arith.constant 46 : index
    %178 = memref.load %arg2[%c46] : memref<49xf32, #tpu.memory_space<smem>>
    %179 = vector.broadcast %178 : f32 to vector<8x128xf32>
    %180 = arith.addf %177, %179 : vector<8x128xf32>
    %c37 = arith.constant 37 : index
    %181 = memref.load %arg2[%c37] : memref<49xf32, #tpu.memory_space<smem>>
    %182 = vector.broadcast %181 : f32 to vector<8x128xf32>
    %183 = arith.mulf %87, %182 : vector<8x128xf32>
    %c38 = arith.constant 38 : index
    %184 = memref.load %arg2[%c38] : memref<49xf32, #tpu.memory_space<smem>>
    %185 = vector.broadcast %184 : f32 to vector<8x128xf32>
    %186 = arith.mulf %106, %185 : vector<8x128xf32>
    %187 = arith.addf %183, %186 : vector<8x128xf32>
    %c39 = arith.constant 39 : index
    %188 = memref.load %arg2[%c39] : memref<49xf32, #tpu.memory_space<smem>>
    %189 = vector.broadcast %188 : f32 to vector<8x128xf32>
    %190 = arith.mulf %125, %189 : vector<8x128xf32>
    %191 = arith.addf %187, %190 : vector<8x128xf32>
    %c40 = arith.constant 40 : index
    %192 = memref.load %arg2[%c40] : memref<49xf32, #tpu.memory_space<smem>>
    %193 = vector.broadcast %192 : f32 to vector<8x128xf32>
    %194 = arith.mulf %144, %193 : vector<8x128xf32>
    %195 = arith.addf %191, %194 : vector<8x128xf32>
    %c47 = arith.constant 47 : index
    %196 = memref.load %arg2[%c47] : memref<49xf32, #tpu.memory_space<smem>>
    %197 = vector.broadcast %196 : f32 to vector<8x128xf32>
    %198 = arith.addf %195, %197 : vector<8x128xf32>
    %c41 = arith.constant 41 : index
    %199 = memref.load %arg2[%c41] : memref<49xf32, #tpu.memory_space<smem>>
    %200 = vector.broadcast %199 : f32 to vector<8x128xf32>
    %201 = arith.mulf %87, %200 : vector<8x128xf32>
    %c42 = arith.constant 42 : index
    %202 = memref.load %arg2[%c42] : memref<49xf32, #tpu.memory_space<smem>>
    %203 = vector.broadcast %202 : f32 to vector<8x128xf32>
    %204 = arith.mulf %106, %203 : vector<8x128xf32>
    %205 = arith.addf %201, %204 : vector<8x128xf32>
    %c43 = arith.constant 43 : index
    %206 = memref.load %arg2[%c43] : memref<49xf32, #tpu.memory_space<smem>>
    %207 = vector.broadcast %206 : f32 to vector<8x128xf32>
    %208 = arith.mulf %125, %207 : vector<8x128xf32>
    %209 = arith.addf %205, %208 : vector<8x128xf32>
    %c44 = arith.constant 44 : index
    %210 = memref.load %arg2[%c44] : memref<49xf32, #tpu.memory_space<smem>>
    %211 = vector.broadcast %210 : f32 to vector<8x128xf32>
    %212 = arith.mulf %144, %211 : vector<8x128xf32>
    %213 = arith.addf %209, %212 : vector<8x128xf32>
    %c48 = arith.constant 48 : index
    %214 = memref.load %arg2[%c48] : memref<49xf32, #tpu.memory_space<smem>>
    %215 = vector.broadcast %214 : f32 to vector<8x128xf32>
    %216 = arith.addf %213, %215 : vector<8x128xf32>
    %c0_20 = arith.constant 0 : index
    %c0_21 = arith.constant 0 : index
    %c0_22 = arith.constant 0 : index
    %217 = vector.load %arg3[%c0_20, %c0_21, %c0_22] : memref<4x8x128xf32, #tpu.memory_space<vmem>>, vector<1x8x128xf32>
    %218 = vector.shape_cast %217 : vector<1x8x128xf32> to vector<8x128xf32>
    %219 = vector.shape_cast %162 : vector<8x128xf32> to vector<1x8x128xf32>
    tpu.vector_store %arg3[%c0_20, %c0_21, %c0_22], %219 {strides = array<i32>} : memref<4x8x128xf32, #tpu.memory_space<vmem>>, vector<1x8x128xf32>,
    %c1_23 = arith.constant 1 : index
    %c0_24 = arith.constant 0 : index
    %c0_25 = arith.constant 0 : index
    %220 = vector.load %arg3[%c1_23, %c0_24, %c0_25] : memref<4x8x128xf32, #tpu.memory_space<vmem>>, vector<1x8x128xf32>
    %221 = vector.shape_cast %220 : vector<1x8x128xf32> to vector<8x128xf32>
    %222 = vector.shape_cast %180 : vector<8x128xf32> to vector<1x8x128xf32>
    tpu.vector_store %arg3[%c1_23, %c0_24, %c0_25], %222 {strides = array<i32>} : memref<4x8x128xf32, #tpu.memory_space<vmem>>, vector<1x8x128xf32>,
    %c2_26 = arith.constant 2 : index
    %c0_27 = arith.constant 0 : index
    %c0_28 = arith.constant 0 : index
    %223 = vector.load %arg3[%c2_26, %c0_27, %c0_28] : memref<4x8x128xf32, #tpu.memory_space<vmem>>, vector<1x8x128xf32>
    %224 = vector.shape_cast %223 : vector<1x8x128xf32> to vector<8x128xf32>
    %225 = vector.shape_cast %198 : vector<8x128xf32> to vector<1x8x128xf32>
    tpu.vector_store %arg3[%c2_26, %c0_27, %c0_28], %225 {strides = array<i32>} : memref<4x8x128xf32, #tpu.memory_space<vmem>>, vector<1x8x128xf32>,
    %c3_29 = arith.constant 3 : index
    %c0_30 = arith.constant 0 : index
    %c0_31 = arith.constant 0 : index
    %226 = vector.load %arg3[%c3_29, %c0_30, %c0_31] : memref<4x8x128xf32, #tpu.memory_space<vmem>>, vector<1x8x128xf32>
    %227 = vector.shape_cast %226 : vector<1x8x128xf32> to vector<8x128xf32>
    %228 = vector.shape_cast %216 : vector<8x128xf32> to vector<1x8x128xf32>
    tpu.vector_store %arg3[%c3_29, %c0_30, %c0_31], %228 {strides = array<i32>} : memref<4x8x128xf32, #tpu.memory_space<vmem>>, vector<1x8x128xf32>,
    return
  }
  func.func @transform_0(%arg0: i32) -> (i32, i32, i32) {
    %c0_i32 = arith.constant 0 : i32
    %c0_i32_0 = arith.constant 0 : i32
    %c0_i32_1 = arith.constant 0 : i32
    return %c0_i32, %arg0, %c0_i32_0 : i32, i32, i32
  }
  func.func @transform_1(%arg0: i32) -> i32 {
    %c0_i32 = arith.constant 0 : i32
    %c0_i32_0 = arith.constant 0 : i32
    return %c0_i32 : i32
  }
  func.func @transform_2(%arg0: i32) -> (i32, i32, i32) {
    %c0_i32 = arith.constant 0 : i32
    %c0_i32_0 = arith.constant 0 : i32
    %c0_i32_1 = arith.constant 0 : i32
    return %c0_i32, %arg0, %c0_i32_0 : i32, i32, i32
  }
}

</mosaic_0001>

<bundles_post_ra>
// kernel: tpu_custom_call.1
= control target key start
LH: loop header
LB: loop body
LE: loop exit
PB: predicated region body
PF: predicated region fallthrough
CT: control target
= control target key end

     0   :  { %7 = vsyncpa [#allocation3], 0  ;;  %s484_s0 = inlined_call_operand.hbm [shape: f32[1,8,128], index: 0, kind: input, shape index: {}]   ;;  %s485_s1 = inlined_call_operand.hbm [shape: f32[49], index: 1, kind: input, shape index: {}]   ;;  %s486_s2 = inlined_call_operand.hbm [shape: f32[4,8,128], index: 2, kind: output, shape index: {}]  }
   0x1   :  { %8 = vsyncpa [#allocation5], 0 }
   0x2   :  { %9 = vsyncpa [#allocation4], 0  ;;  %s15_s11 = sshll.u32 %s484_s0, 4  ;;  %s383_s12 = smov [#allocation2]   ;;  %s16_s11 = int_to_ptr.hbm [resolvable:$true] %s15_s11 }
   0x3   :  { %s17_s13 = sshll.u32 %s383_s12, 4  ;;  %s26_s16 = sshll.u32 %s485_s1, 4  ;;  %s18_s13 = int_to_ptr.vmem [resolvable:$true] %s17_s13  ;;  %s27_s16 = int_to_ptr.hbm [resolvable:$true] %s26_s16 }
   0x4   :  { %20 = dma.hbm_to_vmem [thread:$0]  %s16_s11, 128, %s18_s13, [#allocation3]  }
   0x5   :  { %s384_s17 = smov [#allocation6]  }
   0x6   :  { %29 = dma.hbm_to_smem %s27_s16, 16, %s384_s17, [#allocation5]  }
   0x7   :  { %377 = dma.done.wait [#allocation3], 128  }
   0x8   :  { %378 = vsyncadd [#allocation3], 4294967168 }
   0x9   :  { %379 = dma.done.wait [#allocation5], 16  }
   0xa   :  { %380 = vsyncadd [#allocation5], 4294967280 }
   0xb   :  { %38 = sfence }
   0xc   :  { %s40_s18 = sld [smem:[#allocation6]]  ;;  %v39_v0 = vld [vmem:[#allocation2] sm:$0xff] }
   0xd   :  { %s264_s19 = sld [smem:[#allocation6 + $0x2]] }
   0xe   :  { %s265_s0 = sld [smem:[#allocation6 + $0x1]] }
   0xf   :  { %s266_s20 = sld [smem:[#allocation6 + $0x3]] }
  0x10   :  { %s267_s21 = sld [smem:[#allocation6 + $0x4]] }
  0x11   :  { %s409_s22 = sld [smem:[#allocation6 + $0x5]] }
  0x12   :  { %v41_v1 = vstv %s40_s18  ;;  %s411_s23 = sld [smem:[#allocation6 + $0xa]] }
  0x13   :  { %v42_v2 = vmul.f32 %v41_v1, %v39_v0  ;;  %v44_v3 = vstv %s264_s19  ;;  %s270_s1 = sld [smem:[#allocation6 + $0x6]] }
  0x14   :  { %v50_v4 = vstv %s265_s0  ;;  %s271_s24 = sld [smem:[#allocation6 + $0x7]] }
  0x15   :  { %v45_v5 = vadd.f32 %v44_v3, %v42_v2  ;;  %v51_v6 = vmul.f32 %v50_v4, %v39_v0  ;;  %v53_v7 = vstv %s266_s20  ;;  %s413_s25 = sld [smem:[#allocation6 + $0xb]] }
  0x16   :  { %s273_s26 = sld [smem:[#allocation6 + $0x8]]  ;;  %v59_v10 = vstv %s267_s21 }
  0x17   :  { %vm46_vm0 = vcmp.gt.f32.partialorder %v45_v5, 0.0  ;;  %v47_v8 = vmul.f32 0.01, %v45_v5  ;;  %v54_v9 = vadd.f32 %v53_v7, %v51_v6  ;;  %s274_s27 = sld [smem:[#allocation6 + $0x9]]  ;;  %v62_v11 = vstv %s409_s22 }
  0x18   :  { %s416_s28 = sld [smem:[#allocation6 + $0xc]]  ;;  %v66_v22 = vstv %s411_s23 }
  0x19   :  { %v48_v12 = vsel %vm46_vm0, %v45_v5, %v47_v8  ;;  %vm55_vm1 = vcmp.gt.f32.partialorder %v54_v9, 0.0  ;;  %v56_v13 = vmul.f32 0.01, %v54_v9  ;;  %v72_v14 = vstv %s270_s1  ;;  %s418_s29 = sld [smem:[#allocation6 + $0xd]] }
  0x1a   :  { %v60_v15 = vmul.f32 %v59_v10, %v48_v12  ;;  %v73_v16 = vmul.f32 %v72_v14, %v48_v12  ;;  %v75_v17 = vstv %s271_s24  ;;  %s420_s30 = sld [smem:[#allocation6 + $0xe]] }
  0x1b   :  { %v57_v18 = vsel %vm55_vm1, %v54_v9, %v56_v13  ;;  %s422_s3 = sld [smem:[#allocation6 + $0xf]]  ;;  %v79_v23 = vstv %s413_s25 }
  0x1c   :  { %v63_v19 = vmul.f32 %v62_v11, %v57_v18  ;;  %v76_v20 = vmul.f32 %v75_v17, %v57_v18  ;;  %v85_v21 = vstv %s273_s26  ;;  %s424_s4 = sld [smem:[#allocation6 + $0x19]] }
  0x1d   :  { %v86_v24 = vmul.f32 %v85_v21, %v48_v12  ;;  %v88_v25 = vstv %s274_s27  ;;  %s428_s5 = sld [smem:[#allocation6 + $0x10]] }
  0x1e   :  { %v64_v26 = vadd.f32 %v63_v19, %v60_v15  ;;  %v77_v27 = vadd.f32 %v76_v20, %v73_v16  ;;  %v89_v28 = vmul.f32 %v88_v25, %v57_v18  ;;  %s281_s6 = sld [smem:[#allocation6 + $0x11]]  ;;  %v92_v32 = vstv %s416_s28 }
  0x1f   :  { %s430_s7 = sld [smem:[#allocation6 + $0x12]]  ;;  %v98_v33 = vstv %s418_s29 }
  0x20   :  { %v67_v29 = vadd.f32 %v66_v22, %v64_v26  ;;  %v80_v30 = vadd.f32 %v79_v23, %v77_v27  ;;  %v90_v31 = vadd.f32 %v89_v28, %v86_v24  ;;  %s433_s8 = sld [smem:[#allocation6 + $0x1a]]  ;;  %v101_v34 = vstv %s420_s30 }
  0x21   :  { %s284_s9 = sld [smem:[#allocation6 + $0x13]]  ;;  %v105_v41 = vstv %s422_s3 }
  0x22   :  { %vm68_vm2 = vcmp.gt.f32.partialorder %v67_v29, 0.0  ;;  %v69_v35 = vmul.f32 0.01, %v67_v29  ;;  %vm81_vm3 = vcmp.gt.f32.partialorder %v80_v30, 0.0  ;;  %v82_v36 = vmul.f32 0.01, %v80_v30 }
  0x23   :  { %v93_v37 = vadd.f32 %v92_v32, %v90_v31  ;;  %v115_v38 = vstv %s428_s5  ;;  %s285_s10 = sld [smem:[#allocation6 + $0x14]]  ;;  %v109_v56 = vstv %s424_s4 }
  0x24   :  { %v70_v39 = vsel %vm68_vm2, %v67_v29, %v69_v35  ;;  %v83_v40 = vsel %vm81_vm3, %v80_v30, %v82_v36  ;;  %v118_v42 = vstv %s281_s6  ;;  %s286_s11 = sld [smem:[#allocation6 + $0x15]] }
  0x25   :  { %vm94_vm4 = vcmp.gt.f32.partialorder %v93_v37, 0.0  ;;  %v95_v43 = vmul.f32 0.01, %v93_v37  ;;  %v99_v44 = vmul.f32 %v98_v33, %v70_v39  ;;  %v102_v45 = vmul.f32 %v101_v34, %v83_v40  ;;  %s439_s12 = sld [smem:[#allocation6 + $0x1b]] }
  0x26   :  { %v116_v46 = vmul.f32 %v115_v38, %v70_v39  ;;  %v119_v47 = vmul.f32 %v118_v42, %v83_v40  ;;  %v122_v48 = vstv %s430_s7  ;;  %s288_s13 = sld [smem:[#allocation6 + $0x16]]  ;;  %v126_v57 = vstv %s433_s8  ;;  %s385_s7 = smov [#allocation7]  }
  0x27   :  { %v96_v49 = vsel %vm94_vm4, %v93_v37, %v95_v43  ;;  %v103_v50 = vadd.f32 %v102_v45, %v99_v44  ;;  %v132_v51 = vstv %s284_s9  ;;  %s442_s14 = sld [smem:[#allocation6 + $0x17]]  ;;  %s248_s8 = sshll.u32 %s385_s7, 4  ;;  %s249_s8 = int_to_ptr.vmem [resolvable:$true] %s248_s8 }
  0x28   :  { %v106_v52 = vmul.f32 %v105_v41, %v96_v49  ;;  %v120_v53 = vadd.f32 %v119_v47, %v116_v46  ;;  %v123_v54 = vmul.f32 %v122_v48, %v96_v49  ;;  %v133_v55 = vmul.f32 %v132_v51, %v70_v39  ;;  %s444_s15 = sld [smem:[#allocation6 + $0x18]] }
  0x29   :  { %v135_v58 = vstv %s285_s10  ;;  %s448_s16 = sld [smem:[#allocation6 + $0x1c]] }
  0x2a   :  { %v107_v59 = vadd.f32 %v106_v52, %v103_v50  ;;  %v124_v60 = vadd.f32 %v123_v54, %v120_v53  ;;  %v136_v61 = vmul.f32 %v135_v58, %v83_v40  ;;  %v139_v62 = vstv %s286_s11  ;;  %s292_s17 = sld [smem:[#allocation6 + $0x1d]]  ;;  %s250_s11 = sshll.u32 %s486_s2, 4  ;;  %s251_s11 = int_to_ptr.hbm [resolvable:$true] %s250_s11 }
  0x2b   :  { %v140_v63 = vmul.f32 %v139_v62, %v96_v49  ;;  %s293_s18 = sld [smem:[#allocation6 + $0x1e]]  ;;  %v143_v4 = vstv %s439_s12  ;;  %s386_s12 = smov 128  }
  0x2c   :  { %v110_v0 = vadd.f32 %v109_v56, %v107_v59  ;;  %v127_v1 = vadd.f32 %v126_v57, %v124_v60  ;;  %v137_v2 = vadd.f32 %v136_v61, %v133_v55  ;;  %v149_v3 = vstv %s288_s13  ;;  %s450_s19 = sld [smem:[#allocation6 + $0x1f]]  ;;  %s387_s13 = smov 8  }
  0x2d   :  { %v150_v5 = vmul.f32 %v149_v3, %v70_v39  ;;  %v152_v6 = vstv %s442_s14  ;;  %s454_s0 = sld [smem:[#allocation6 + $0x20]] }
  0x2e   :  { %vm111_vm5 = vcmp.gt.f32.partialorder %v110_v0, 0.0  ;;  %v112_v7 = vmul.f32 0.01, %v110_v0  ;;  %vm128_vm6 = vcmp.gt.f32.partialorder %v127_v1, 0.0  ;;  %v129_v8 = vmul.f32 0.01, %v127_v1 }
  0x2f   :  { %v141_v9 = vadd.f32 %v140_v63, %v137_v2  ;;  %v153_v10 = vmul.f32 %v152_v6, %v83_v40  ;;  %v156_v11 = vstv %s444_s15  ;;  %s457_s20 = sld [smem:[#allocation6 + $0x2d]]  ;;  %v160_v20 = vstv %s448_s16 }
  0x30   :  { %v459_v12 = vsel %vm111_vm5, %v110_v0, %v112_v7  ;;  %v461_v13 = vsel %vm128_vm6, %v127_v1, %v129_v8  ;;  %v157_v14 = vmul.f32 %v156_v11, %v96_v49  ;;  %v166_v15 = vstv %s292_s17  ;;  %s297_s21 = sld [smem:[#allocation6 + $0x21]] }
  0x31   :  { %v144_v16 = vadd.f32 %v143_v4, %v141_v9  ;;  %v154_v17 = vadd.f32 %v153_v10, %v150_v5  ;;  %v167_v18 = vmul.f32 %v166_v15, %v459_v12  ;;  %v169_v19 = vstv %s293_s18  ;;  %s298_s22 = sld [smem:[#allocation6 + $0x22]] }
  0x32   :  { %v170_v21 = vmul.f32 %v169_v19, %v461_v13  ;;  %s299_s23 = sld [smem:[#allocation6 + $0x23]]  ;;  %v173_v24 = vstv %s450_s19 }
  0x33   :  { %vm145_vm7 = vcmp.gt.f32.partialorder %v144_v16, 0.0  ;;  %v146_v22 = vmul.f32 0.01, %v144_v16  ;;  %v158_v23 = vadd.f32 %v157_v14, %v154_v17  ;;  %s300_s1 = sld [smem:[#allocation6 + $0x24]]  ;;  %v177_v29 = vstv %s454_s0 }
  0x34   :  { %v171_v25 = vadd.f32 %v170_v21, %v167_v18  ;;  %s467_s24 = sld [smem:[#allocation6 + $0x2e]] }
  0x35   :  { %v147_v26 = vsel %vm145_vm7, %v144_v16, %v146_v22  ;;  %v161_v27 = vadd.f32 %v160_v20, %v158_v23  ;;  %s302_s25 = sld [smem:[#allocation6 + $0x25]]  ;;  %v181_v43 = vstv %s457_s20 }
  0x36   :  { %v174_v28 = vmul.f32 %v173_v24, %v147_v26  ;;  %v184_v30 = vstv %s297_s21  ;;  %s303_s26 = sld [smem:[#allocation6 + $0x26]] }
  0x37   :  { %vm162_vm8 = vcmp.gt.f32.partialorder %v161_v27, 0.0  ;;  %v163_v31 = vmul.f32 0.01, %v161_v27  ;;  %v185_v32 = vmul.f32 %v184_v30, %v459_v12  ;;  %v187_v33 = vstv %s298_s22  ;;  %s304_s27 = sld [smem:[#allocation6 + $0x27]] }
  0x38   :  { %v175_v34 = vadd.f32 %v174_v28, %v171_v25  ;;  %v188_v35 = vmul.f32 %v187_v33, %v461_v13  ;;  %v191_v36 = vstv %s299_s23  ;;  %s305_s28 = sld [smem:[#allocation6 + $0x28]] }
  0x39   :  { %v164_v37 = vsel %vm162_vm8, %v161_v27, %v163_v31  ;;  %v192_v38 = vmul.f32 %v191_v36, %v147_v26  ;;  %v195_v39 = vstv %s300_s1  ;;  %s472_s29 = sld [smem:[#allocation6 + $0x2f]] }
  0x3a   :  { %v178_v40 = vmul.f32 %v177_v29, %v164_v37  ;;  %v189_v41 = vadd.f32 %v188_v35, %v185_v32  ;;  %v196_v42 = vmul.f32 %v195_v39, %v164_v37  ;;  %s307_s30 = sld [smem:[#allocation6 + $0x29]]  ;;  %v199_v49 = vstv %s467_s24 }
  0x3b   :  { %v202_v44 = vstv %s302_s25  ;;  %s308_s3 = sld [smem:[#allocation6 + $0x2a]] }
  0x3c   :  { %v179_v45 = vadd.f32 %v178_v40, %v175_v34  ;;  %v193_v46 = vadd.f32 %v192_v38, %v189_v41  ;;  %v203_v47 = vmul.f32 %v202_v44, %v459_v12  ;;  %v205_v48 = vstv %s303_s26  ;;  %s309_s4 = sld [smem:[#allocation6 + $0x2b]] }
  0x3d   :  { %v206_v50 = vmul.f32 %v205_v48, %v461_v13  ;;  %v209_v51 = vstv %s304_s27  ;;  %s310_s5 = sld [smem:[#allocation6 + $0x2c]] }
  0x3e   :  { %v182_v52 = vadd.f32 %v181_v43, %v179_v45  ;;  %v197_v53 = vadd.f32 %v196_v42, %v193_v46  ;;  %v210_v54 = vmul.f32 %v209_v51, %v147_v26  ;;  %v213_v55 = vstv %s305_s28  ;;  %s311_s6 = sld [smem:[#allocation6 + $0x30]] }
  0x3f   :  { %v207_v56 = vadd.f32 %v206_v50, %v203_v47  ;;  %v214_v57 = vmul.f32 %v213_v55, %v164_v37  ;;  %v217_v63 = vstv %s472_s29 }
  0x40   :  { %237 = vst [vmem:[#allocation7] sm:$0xff] %v182_v52  ;;  %v200_v58 = vadd.f32 %v199_v49, %v197_v53  ;;  %v220_v59 = vstv %s307_s30 }
  0x41   :  { %v211_v60 = vadd.f32 %v210_v54, %v207_v56  ;;  %v221_v61 = vmul.f32 %v220_v59, %v459_v12  ;;  %v223_v62 = vstv %s308_s3 }
  0x42   :  { %239 = vst [vmem:[#allocation7 + $0x8] sm:$0xff] %v200_v58  ;;  %v224_v0 = vmul.f32 %v223_v62, %v461_v13  ;;  %v227_v1 = vstv %s309_s4 }
  0x43   :  { %v215_v2 = vadd.f32 %v214_v57, %v211_v60  ;;  %v228_v3 = vmul.f32 %v227_v1, %v147_v26  ;;  %v231_v4 = vstv %s310_s5 }
  0x44   :  { %v225_v5 = vadd.f32 %v224_v0, %v221_v61  ;;  %v232_v6 = vmul.f32 %v231_v4, %v164_v37  ;;  %v235_v9 = vstv %s311_s6 }
  0x45   :  { %v218_v7 = vadd.f32 %v217_v63, %v215_v2 }
  0x46   :  { %v229_v8 = vadd.f32 %v228_v3, %v225_v5 }
  0x47   :  { %241 = vst [vmem:[#allocation7 + $0x10] sm:$0xff] %v218_v7 }
  0x48   :  { %v233_v10 = vadd.f32 %v232_v6, %v229_v8 }
  0x4a   :  { %v236_v11 = vadd.f32 %v235_v9, %v233_v10 }
  0x4c   :  { %243 = vst [vmem:[#allocation7 + $0x18] sm:$0xff] %v236_v11 }
  0x4d   :  { %256 = dma.vmem_to_hbm [thread:$0]  %s249_s8, 512, %s251_s11, [#allocation4], %s386_s12, %s386_s12, %s387_s13  }
  0x4e   :  { %381 = dma.done.wait [#allocation4], 512  }
  0x4f   :  { %382 = vsyncadd [#allocation4], 4294966784 }
  0x50   :  { %261 = vsyncpa [#allocation3], 1 }
  0x51   :  { %262 = vsyncpa [#allocation4], 1 }
  0x52   :  { %263 = vsyncpa [#allocation5], 1 }

</bundles_post_ra>
